<compile_context>
chip_gen: v7x
topology: tpu7x:2x2x1
jax: 0.10.0
libtpu: 0.0.40
codegen_flags: <defaults>
</compile_context>

<pallas_src>
import functools
import math

import jax
import jax.numpy as jnp
from jax.experimental import pallas as pl
from jax.experimental.pallas import tpu as pltpu

LANE = 128     # vreg lane width
SUBLANE = 8    # f32 sublane count


def _round_up(x, m):
    return ((x + m - 1) // m) * m


def _num_tensorcores():
    """2 on dual-TensorCore chips (v7x), else 1.  Best-effort; falls back to 1."""
    try:
        kind = jax.devices()[0].device_kind.lower()
        return 2 if "v7" in kind else 1
    except Exception:
        return 1


# -----------------------------------------------------------------------------
# Fused kernel: all layers in one body; activation never leaves the chip.
# -----------------------------------------------------------------------------
def _fused_mlp_kernel(*refs, num_layers):
    """refs = (x_ref, w0, b0, w1, b1, ..., w_{L-1}, b_{L-1}, o_ref).

    x_ref : (TM, K)      f32 row tile (ragged last tile masked by Pallas)
    w_i   : (K_i, N_i)   bf16 full padded weight, VMEM-resident across steps
    b_i   : (1,  N_i)    bf16
    o_ref : (TM, N_last) f32
    """
    x_ref = refs[0]
    o_ref = refs[-1]
    wb = refs[1:-1]

    y = x_ref[...]                                # f32 activations
    for i in range(num_layers):
        w = wb[2 * i][...]                        # bf16
        b = wb[2 * i + 1][...]                    # bf16
        # bf16 MXU matmul with f32 accumulation; bias + ReLU ride on the VPU.
        y = jnp.dot(y.astype(w.dtype), w, preferred_element_type=jnp.float32)
        y = y + b.astype(jnp.float32)
        if i < num_layers - 1:                    # ReLU on all but the last layer
            y = jnp.maximum(y, 0.0)
    o_ref[...] = y.astype(o_ref.dtype)


# -----------------------------------------------------------------------------
# Parameter handling
# -----------------------------------------------------------------------------
def init_mlp_params(key, input_dim, hidden_dim, output_dim, num_layers):
    """Init mimicking PyTorch nn.Linear defaults: kaiming_uniform_(a=sqrt(5))
    => bound = 1/sqrt(fan_in).  Weights stored already transposed as (in, out)."""
    h = [hidden_dim] * (num_layers - 1)
    in_dims = [input_dim] + h
    out_dims = h + [output_dim]
    params = []
    for n_in, n_out in zip(in_dims, out_dims):
        key, kw, kb = jax.random.split(key, 3)
        bound = 1.0 / math.sqrt(n_in)
        w = jax.random.uniform(kw, (n_in, n_out), jnp.float32, -bound, bound)
        b = jax.random.uniform(kb, (n_out,), jnp.float32, -bound, bound)
        params.append((w, b))
    return params


def pad_params(params, input_dim, param_dtype=jnp.bfloat16):
    """Zero-pad out-features (and chained in-features) up to multiples of 128
    and cast to bf16.  Done ONCE at init so the kernel always sees lane-dense,
    half-width tiles.  Padded rows/cols are zero -> contribute nothing."""
    padded = []
    prev_in = input_dim            # x itself stays unpadded (its K is the full dim)
    for (w, b) in params:
        n_in, n_out = w.shape
        n_out_p = _round_up(n_out, LANE)
        w_p = jnp.zeros((prev_in, n_out_p), param_dtype).at[:n_in, :n_out].set(
            w.astype(param_dtype))
        b_p = jnp.zeros((1, n_out_p), param_dtype).at[0, :n_out].set(
            b.astype(param_dtype))
        padded.append((w_p, b_p))
        prev_in = n_out_p
    return padded


# -----------------------------------------------------------------------------
# Wrapper
# -----------------------------------------------------------------------------
def mlp_forward_pallas(x, padded_params, output_dim, *, tm=512):
    """x: (..., input_dim) -> (..., output_dim) via one fused pallas_call."""
    num_layers = len(padded_params)
    lead = x.shape[:-1]
    K = x.shape[-1]
    x2d = x.reshape(-1, K)
    M = x2d.shape[0]
    n_out_pad = padded_params[-1][0].shape[1]

    # ---- row-tile / grid selection (no wrapper-side row padding) ----------
    n_tc = _num_tensorcores()
    if tm >= M:
        if n_tc > 1 and M >= 2 * SUBLANE:
            # dual-TC (v7x): split rows across both cores
            tm = _round_up(pl.cdiv(M, n_tc), SUBLANE)
        else:
            # single-TC (v5e/v6e): one big tile; block == full dim is always legal
            tm = M
    else:
        tm = max(SUBLANE, (tm // SUBLANE) * SUBLANE)          # (8,128) rule
        nt = pl.cdiv(M, tm)
        if n_tc > 1 and nt % n_tc:
            nt += n_tc - nt % n_tc                            # even count for megacore
        # balance tiles so the last step isn't mostly padding
        tm = max(SUBLANE, min(tm, _round_up(pl.cdiv(M, nt), SUBLANE)))
    grid = (pl.cdiv(M, tm),)

    in_specs = [pl.BlockSpec((tm, K), lambda i: (i, 0))]      # row-tiled input
    flat_wb = []
    for (w_p, b_p) in padded_params:
        # constant index_map: fetched once, stays VMEM-resident across grid steps
        in_specs.append(pl.BlockSpec(w_p.shape, lambda i: (0, 0)))
        in_specs.append(pl.BlockSpec(b_p.shape, lambda i: (0, 0)))
        flat_wb += [w_p, b_p]

    # Explicit VMEM budget: double-buffered x/out tiles + (default double-
    # buffered) weights, with 4x headroom; capped at 56 MiB (safe on v7x 64 MiB).
    itemsize = x2d.dtype.itemsize
    act_bytes = tm * (K + n_out_pad) * itemsize
    wb_bytes = sum(w.size * w.dtype.itemsize + b.size * b.dtype.itemsize
                   for (w, b) in padded_params)
    vmem_limit = int(min(max(4 * 2 * (act_bytes + wb_bytes), 32 << 20), 56 << 20))

    kernel = functools.partial(_fused_mlp_kernel, num_layers=num_layers)
    out = pl.pallas_call(
        kernel,
        out_shape=jax.ShapeDtypeStruct((M, n_out_pad), x2d.dtype),
        grid_spec=pltpu.PrefetchScalarGridSpec(
            num_scalar_prefetch=0,
            grid=grid,
            in_specs=in_specs,
            out_specs=pl.BlockSpec((tm, n_out_pad), lambda i: (i, 0)),
        ),
        compiler_params=pltpu.CompilerParams(
            # row tiles are independent -> shard across both TensorCores on v7x
            dimension_semantics=("parallel",),
            vmem_limit_bytes=vmem_limit,
        ),
    )(x2d, *flat_wb)

    out = out[:, :output_dim]           # drop padded output lanes in the wrapper
    return out.reshape(*lead, output_dim)


def mlp_reference(x, params):
    """Pure-JAX f32 reference (unpadded params) for correctness checks."""
    num_layers = len(params)
    for i, (w, b) in enumerate(params):
        x = jnp.dot(x, w) + b
        if i < num_layers - 1:
            x = jnp.maximum(x, 0.0)
    return x


if __name__ == "__main__":
    key = jax.random.PRNGKey(0)
    k_in, k_params, k_in2, k_params2 = jax.random.split(key, 4)

    # --- small config matching the module: MLP(16, 32, 4, 3), x: (2, 8, 16) ---
    input_dim, hidden_dim, output_dim, num_layers = 16, 32, 4, 3
    batch, seq = 2, 8
    x = jax.random.normal(k_in, (batch, seq, input_dim), jnp.float32)
    params = init_mlp_params(k_params, input_dim, hidden_dim, output_dim, num_layers)
    padded = pad_params(params, input_dim)

    out = mlp_forward_pallas(x, padded, output_dim)
    out = jax.block_until_ready(out)
    ref = mlp_reference(x, params)
    assert out.shape == (batch, seq, output_dim)
    # bf16 weights/matmuls with f32 accumulation -> loosened tolerance
    assert jnp.allclose(out, ref, atol=2e-2, rtol=2e-2), "small-shape mismatch"

    # --- DETR-scale smoke test: hidden 256, multi-step row grid exercising the
    #     ragged (masked) last block and megacore-balanced tiling.
    in2, hid2, out2, nl2 = 256, 256, 4, 3
    b2, s2 = 3, 50                               # M = 150 rows
    x_big = jax.random.normal(k_in2, (b2, s2, in2), jnp.float32)
    params_big = init_mlp_params(k_params2, in2, hid2, out2, nl2)
    padded_big = pad_params(params_big, in2)

    out_big = mlp_forward_pallas(x_big, padded_big, out2, tm=64)
    out_big = jax.block_until_ready(out_big)
    ref_big = mlp_reference(x_big, params_big)
    assert out_big.shape == (b2, s2, out2)
    assert jnp.allclose(out_big, ref_big, atol=3e-2, rtol=3e-2), "tiled mismatch"

    print("KERNEL_OK")
</pallas_src>

<mosaic_0001>
module attributes {stable_mosaic.version = 11 : i64} {
  func.func @_fused_mlp_kernel(%arg0: i32, %arg1: memref<16x16xf32, #tpu.memory_space<vmem>>, %arg2: memref<16x128xbf16, #tpu.memory_space<vmem>>, %arg3: memref<1x128xbf16, #tpu.memory_space<vmem>>, %arg4: memref<128x128xbf16, #tpu.memory_space<vmem>>, %arg5: memref<1x128xbf16, #tpu.memory_space<vmem>>, %arg6: memref<128x128xbf16, #tpu.memory_space<vmem>>, %arg7: memref<1x128xbf16, #tpu.memory_space<vmem>>, %arg8: memref<16x128xf32, #tpu.memory_space<vmem>>) attributes {dimension_semantics = [#tpu.dimension_semantics<parallel>], iteration_bounds = array<i64: 1>, scalar_prefetch = 0 : i64, scratch_operands = 0 : i64, tpu.core_type = #tpu.core_type<tc>, window_params = [{transform_indices = @transform_0, window_bounds = array<i64: 16, 16>}, {pipeline_mode = #tpu.pipeline_mode<synchronous>, transform_indices = @transform_1, window_bounds = array<i64: 16, 128>}, {pipeline_mode = #tpu.pipeline_mode<synchronous>, transform_indices = @transform_2, window_bounds = array<i64: 1, 128>}, {pipeline_mode = #tpu.pipeline_mode<synchronous>, transform_indices = @transform_3, window_bounds = array<i64: 128, 128>}, {pipeline_mode = #tpu.pipeline_mode<synchronous>, transform_indices = @transform_4, window_bounds = array<i64: 1, 128>}, {pipeline_mode = #tpu.pipeline_mode<synchronous>, transform_indices = @transform_5, window_bounds = array<i64: 128, 128>}, {pipeline_mode = #tpu.pipeline_mode<synchronous>, transform_indices = @transform_6, window_bounds = array<i64: 1, 128>}, {transform_indices = @transform_7, window_bounds = array<i64: 16, 128>}]} {
    %c0 = arith.constant 0 : index
    %c0_0 = arith.constant 0 : index
    %0 = vector.load %arg1[%c0, %c0_0] : memref<16x16xf32, #tpu.memory_space<vmem>>, vector<16x16xf32>
    %c0_1 = arith.constant 0 : index
    %c0_2 = arith.constant 0 : index
    %1 = vector.load %arg2[%c0_1, %c0_2] : memref<16x128xbf16, #tpu.memory_space<vmem>>, vector<16x128xbf16>
    %c0_3 = arith.constant 0 : index
    %c0_4 = arith.constant 0 : index
    %2 = vector.load %arg3[%c0_3, %c0_4] : memref<1x128xbf16, #tpu.memory_space<vmem>>, vector<1x128xbf16>
    %3 = arith.truncf %0 : vector<16x16xf32> to vector<16x16xbf16>
    %cst = arith.constant dense<0.000000e+00> : vector<16x128xf32>
    %4 = tpu.matmul %3, %1, %cst {dimension_numbers = #tpu.dot_dimension_numbers<[1], [0], [0], [1], [0, 0, 1, 1], [], []>} : vector<16x16xbf16>, vector<16x128xbf16>, vector<16x128xf32> -> vector<16x128xf32>
    %5 = arith.extf %2 : vector<1x128xbf16> to vector<1x128xf32>
    %6 = vector.broadcast %5 : vector<1x128xf32> to vector<16x128xf32>
    %7 = arith.addf %4, %6 : vector<16x128xf32>
    %cst_5 = arith.constant 0.000000e+00 : f32
    %8 = vector.broadcast %cst_5 : f32 to vector<16x128xf32>
    %9 = arith.maximumf %7, %8 : vector<16x128xf32>
    %c0_6 = arith.constant 0 : index
    %c0_7 = arith.constant 0 : index
    %10 = vector.load %arg4[%c0_6, %c0_7] : memref<128x128xbf16, #tpu.memory_space<vmem>>, vector<128x128xbf16>
    %c0_8 = arith.constant 0 : index
    %c0_9 = arith.constant 0 : index
    %11 = vector.load %arg5[%c0_8, %c0_9] : memref<1x128xbf16, #tpu.memory_space<vmem>>, vector<1x128xbf16>
    %12 = arith.truncf %9 : vector<16x128xf32> to vector<16x128xbf16>
    %cst_10 = arith.constant dense<0.000000e+00> : vector<16x128xf32>
    %13 = tpu.matmul %12, %10, %cst_10 {dimension_numbers = #tpu.dot_dimension_numbers<[1], [0], [0], [1], [0, 0, 1, 1], [], []>} : vector<16x128xbf16>, vector<128x128xbf16>, vector<16x128xf32> -> vector<16x128xf32>
    %14 = arith.extf %11 : vector<1x128xbf16> to vector<1x128xf32>
    %15 = vector.broadcast %14 : vector<1x128xf32> to vector<16x128xf32>
    %16 = arith.addf %13, %15 : vector<16x128xf32>
    %cst_11 = arith.constant 0.000000e+00 : f32
    %17 = vector.broadcast %cst_11 : f32 to vector<16x128xf32>
    %18 = arith.maximumf %16, %17 : vector<16x128xf32>
    %c0_12 = arith.constant 0 : index
    %c0_13 = arith.constant 0 : index
    %19 = vector.load %arg6[%c0_12, %c0_13] : memref<128x128xbf16, #tpu.memory_space<vmem>>, vector<128x128xbf16>
    %c0_14 = arith.constant 0 : index
    %c0_15 = arith.constant 0 : index
    %20 = vector.load %arg7[%c0_14, %c0_15] : memref<1x128xbf16, #tpu.memory_space<vmem>>, vector<1x128xbf16>
    %21 = arith.truncf %18 : vector<16x128xf32> to vector<16x128xbf16>
    %cst_16 = arith.constant dense<0.000000e+00> : vector<16x128xf32>
    %22 = tpu.matmul %21, %19, %cst_16 {dimension_numbers = #tpu.dot_dimension_numbers<[1], [0], [0], [1], [0, 0, 1, 1], [], []>} : vector<16x128xbf16>, vector<128x128xbf16>, vector<16x128xf32> -> vector<16x128xf32>
    %23 = arith.extf %20 : vector<1x128xbf16> to vector<1x128xf32>
    %24 = vector.broadcast %23 : vector<1x128xf32> to vector<16x128xf32>
    %25 = arith.addf %22, %24 : vector<16x128xf32>
    %c0_17 = arith.constant 0 : index
    %c0_18 = arith.constant 0 : index
    %26 = vector.load %arg8[%c0_17, %c0_18] : memref<16x128xf32, #tpu.memory_space<vmem>>, vector<16x128xf32>
    tpu.vector_store %arg8[%c0_17, %c0_18], %25 {strides = array<i32>} : memref<16x128xf32, #tpu.memory_space<vmem>>, vector<16x128xf32>,
    return
  }
  func.func @transform_0(%arg0: i32) -> (i32, i32) {
    %c0_i32 = arith.constant 0 : i32
    %c0_i32_0 = arith.constant 0 : i32
    return %arg0, %c0_i32 : i32, i32
  }
  func.func @transform_1(%arg0: i32) -> (i32, i32) {
    %c0_i32 = arith.constant 0 : i32
    %c0_i32_0 = arith.constant 0 : i32
    %c0_i32_1 = arith.constant 0 : i32
    return %c0_i32, %c0_i32_0 : i32, i32
  }
  func.func @transform_2(%arg0: i32) -> (i32, i32) {
    %c0_i32 = arith.constant 0 : i32
    %c0_i32_0 = arith.constant 0 : i32
    %c0_i32_1 = arith.constant 0 : i32
    return %c0_i32, %c0_i32_0 : i32, i32
  }
  func.func @transform_3(%arg0: i32) -> (i32, i32) {
    %c0_i32 = arith.constant 0 : i32
    %c0_i32_0 = arith.constant 0 : i32
    %c0_i32_1 = arith.constant 0 : i32
    return %c0_i32, %c0_i32_0 : i32, i32
  }
  func.func @transform_4(%arg0: i32) -> (i32, i32) {
    %c0_i32 = arith.constant 0 : i32
    %c0_i32_0 = arith.constant 0 : i32
    %c0_i32_1 = arith.constant 0 : i32
    return %c0_i32, %c0_i32_0 : i32, i32
  }
  func.func @transform_5(%arg0: i32) -> (i32, i32) {
    %c0_i32 = arith.constant 0 : i32
    %c0_i32_0 = arith.constant 0 : i32
    %c0_i32_1 = arith.constant 0 : i32
    return %c0_i32, %c0_i32_0 : i32, i32
  }
  func.func @transform_6(%arg0: i32) -> (i32, i32) {
    %c0_i32 = arith.constant 0 : i32
    %c0_i32_0 = arith.constant 0 : i32
    %c0_i32_1 = arith.constant 0 : i32
    return %c0_i32, %c0_i32_0 : i32, i32
  }
  func.func @transform_7(%arg0: i32) -> (i32, i32) {
    %c0_i32 = arith.constant 0 : i32
    %c0_i32_0 = arith.constant 0 : i32
    return %arg0, %c0_i32 : i32, i32
  }
}

</mosaic_0001>

<bundles_post_ra>
// kernel: tpu_custom_call.1
= control target key start
LH: loop header
LB: loop body
LE: loop exit
PB: predicated region body
PF: predicated region fallthrough
CT: control target
= control target key end

     0   :  { %12 = vsyncpa [#allocation3], 0  ;;  %s789_s0 = inlined_call_operand.hbm [shape: f32[16,16], index: 0, kind: input, shape index: {}]   ;;  %s790_s1 = inlined_call_operand.hbm [shape: bf16[16,128], index: 1, kind: input, shape index: {}]   ;;  %s791_s2 = inlined_call_operand.vmem [shape: bf16[1,128], index: 2, kind: input, shape index: {}]   ;;  %s792_s3 = inlined_call_operand.hbm [shape: bf16[128,128], index: 3, kind: input, shape index: {}]   ;;  %s793_s4 = inlined_call_operand.vmem [shape: bf16[1,128], index: 4, kind: input, shape index: {}]   ;;  %s794_s5 = inlined_call_operand.hbm [shape: bf16[128,128], index: 5, kind: input, shape index: {}]   ;;  %s795_s6 = inlined_call_operand.vmem [shape: bf16[1,128], index: 6, kind: input, shape index: {}]   ;;  %s796_s7 = inlined_call_operand.hbm [shape: f32[16,128], index: 7, kind: output, shape index: {}]  }
   0x1   :  { %13 = vsyncpa [#allocation6], 0 }
   0x2   :  { %14 = vsyncpa [#allocation9], 0 }
   0x3   :  { %15 = vsyncpa [#allocation4], 0  ;;  %s624_s24 = smov [#allocation5]   ;;  %s506_s28 = scalar_lea.hbm %s790_s1, 128 }
   0x4   :  { %s33_s25 = sshll.u32 %s624_s24, 4  ;;  %p507_p0 = scmp.ne.s32.totalorder %s790_s1, %s506_s28  ;;  %s34_s25 = int_to_ptr.vmem [resolvable:$true] %s33_s25 }
   0x5   :  { %p510_p1 = scmp.lt.u32.totalorder %s506_s28, %s790_s1 }
   0x7   :  { %p512_p2 = pnand %p510_p1, %p507_p0 }
   0x9   :  { %515 = shalt.err (!%p512_p2)
}
   0xa   :  { %s516_s10 = scalar_lea.vmem %s34_s25, 128  ;;  %p521_p4 = scmp.lt.s32.totalorder %s34_s25, %s34_s25 }
   0xb   :  { %p517_p3 = scmp.ne.s32.totalorder %s34_s25, %s516_s10  ;;  %p522_p5 = scmp.lt.s32.totalorder %s516_s10, %s516_s10 }
   0xd   :  { %p523_p6 = por %p522_p5, %p521_p4 }
   0xf   :  { %p524_p7 = pnand %p523_p6, %p517_p3 }
  0x11   :  { %527 = shalt.err (!%p524_p7)
}
  0x12   :  { %s625_s11 = smov 64   ;;  %s626_s12 = smov 4  }
  0x13   :  { %39 = dma.hbm_to_vmem [thread:$0]  %s790_s1, 128, %s34_s25, [#allocation6], %s625_s11, %s625_s11, %s626_s12  }
  0x14   :  { %s627_s15 = smov [#allocation2]   ;;  %s528_s19 = scalar_lea.hbm %s789_s0, 256 }
  0x15   :  { %s21_s16 = sshll.u32 %s627_s15, 4  ;;  %p529_p8 = scmp.ne.s32.totalorder %s789_s0, %s528_s19  ;;  %s22_s16 = int_to_ptr.vmem [resolvable:$true] %s21_s16 }
  0x16   :  { %p532_p9 = scmp.lt.u32.totalorder %s528_s19, %s789_s0 }
  0x18   :  { %p534_p10 = pnand %p532_p9, %p529_p8 }
  0x1a   :  { %537 = shalt.err (!%p534_p10)
}
  0x1b   :  { %s538_s24 = scalar_lea.vmem %s22_s16, 256  ;;  %p543_p12 = scmp.lt.s32.totalorder %s22_s16, %s22_s16 }
  0x1c   :  { %p539_p11 = scmp.ne.s32.totalorder %s22_s16, %s538_s24  ;;  %p544_p13 = scmp.lt.s32.totalorder %s538_s24, %s538_s24 }
  0x1e   :  { %p545_p0 = por %p544_p13, %p543_p12 }
  0x20   :  { %p546_p1 = pnand %p545_p0, %p539_p11 }
  0x22   :  { %549 = shalt.err (!%p546_p1)
}
  0x23   :  { %s628_s1 = smov 128   ;;  %s629_s25 = smov 8  }
  0x24   :  { %27 = dma.hbm_to_vmem [thread:$0]  %s789_s0, 256, %s22_s16, [#allocation3], %s628_s1, %s628_s1, %s629_s25  }
  0x25   :  { %s630_s28 = smov [#allocation7]   ;;  %s631_s30 = smov [#allocation8]  }
  0x26   :  { %s47_s29 = sshll.u32 %s630_s28, 4  ;;  %s61_s8 = sshll.u32 %s631_s30, 4  ;;  %s48_s29 = int_to_ptr.vmem [resolvable:$true] %s47_s29  ;;  %s705_s8 = int_to_ptr.vmem [resolvable:$true] %s61_s8 }
  0x27   :  { %s550_s13 = scalar_lea.hbm %s792_s3, 1024 }
  0x28   :  { %p551_p2 = scmp.ne.s32.totalorder %s792_s3, %s550_s13  ;;  %p554_p3 = scmp.lt.u32.totalorder %s550_s13, %s792_s3 }
  0x2a   :  { %p556_p4 = pnand %p554_p3, %p551_p2 }
  0x2c   :  { %559 = shalt.err (!%p556_p4)
}
  0x2d   :  { %s560_s0 = scalar_lea.vmem %s48_s29, 1024  ;;  %p565_p6 = scmp.lt.s32.totalorder %s48_s29, %s48_s29 }
  0x2e   :  { %p561_p5 = scmp.ne.s32.totalorder %s48_s29, %s560_s0  ;;  %p566_p7 = scmp.lt.s32.totalorder %s560_s0, %s560_s0 }
  0x30   :  { %p567_p8 = por %p566_p7, %p565_p6 }
  0x32   :  { %p568_p9 = pnand %p567_p8, %p561_p5 }
  0x34   :  { %571 = shalt.err (!%p568_p9)
}
  0x35   :  { %53 = dma.hbm_to_vmem [thread:$0]  %s792_s3, 1024, %s48_s29, [#allocation6], %s625_s11, %s625_s11, %s626_s12  }
  0x36   :  { %s572_s22 = scalar_lea.hbm %s794_s5, 1024 }
  0x37   :  { %p573_p10 = scmp.ne.s32.totalorder %s794_s5, %s572_s22  ;;  %p576_p11 = scmp.lt.u32.totalorder %s572_s22, %s794_s5 }
  0x39   :  { %p578_p12 = pnand %p576_p11, %p573_p10 }
  0x3b   :  { %581 = shalt.err (!%p578_p12)
}
  0x3c   :  { %s582_s28 = scalar_lea.vmem %s705_s8, 1024  ;;  %p587_p0 = scmp.lt.s32.totalorder %s705_s8, %s705_s8 }
  0x3d   :  { %p583_p13 = scmp.ne.s32.totalorder %s705_s8, %s582_s28  ;;  %p588_p1 = scmp.lt.s32.totalorder %s582_s28, %s582_s28 }
  0x3f   :  { %p589_p2 = por %p588_p1, %p587_p0 }
  0x41   :  { %p590_p3 = pnand %p589_p2, %p583_p13 }
  0x43   :  { %593 = shalt.err (!%p590_p3)
}
  0x44   :  { %67 = dma.hbm_to_vmem [thread:$0]  %s794_s5, 1024, %s705_s8, [#allocation9], %s625_s11, %s625_s11, %s626_s12  }
  0x45   :  { %616 = dma.done.wait [#allocation3], 256  }
  0x46   :  { %617 = vsyncadd [#allocation3], 4294967040 }
  0x47   :  { %618 = dma.done.wait [#allocation6], 1152  }
  0x48   :  { %619 = vsyncadd [#allocation6], 4294966144 }
  0x49   :  { %620 = dma.done.wait [#allocation9], 1024  }
  0x4a   :  { %621 = vsyncadd [#allocation9], 4294966272  ;;  %v632_v0 = vmov 0.0   ;;  %vm633_vm0 = vmmov 0   ;;  %v489_v1 = vld [vmem:[#allocation5] sm:$0xff]   ;;  %v83_v2 = vld [vmem:[#allocation2] sm:$0xff]  ;;  %v90_v19 = vlaneseq }
  0x4b   :  { %432 = vmatprep.subr.bf16.mxu0 %v632_v0  ;;  %434 = vmatprep.mubr.msk.bf16.mxu0 %vm633_vm0, %v632_v0  ;;  %v84_v3 = vld [vmem:[#allocation2 + $0x8] sm:$0xff]  ;;  %vm100_vm1 = vcmask 130048   ;;  %v490_v5 = vld [vmem:[#allocation7] sm:$0xff]   ;;  %v491_v6 = vld [vmem:[#allocation7 + $0x8] sm:$0xff]  }
  0x4c   :  { %438 = vmatprep.subr.bf16.mxu1 %v632_v0  ;;  %454 = vmatprep.mubr.msk.bf16.mxu1 %vm633_vm0, %v632_v0  ;;  %v88_v4 = vpack.c.bf16 %v84_v3, %v83_v2  ;;  %v492_v7 = vld [vmem:[#allocation7 + $0x10] sm:$0xff]   ;;  %v493_v8 = vld [vmem:[#allocation7 + $0x18] sm:$0xff]   ;;  %v494_v9 = vld [vmem:[#allocation7 + $0x20] sm:$0xff]   ;;  %v91_v20 = vshrl.u32 %v90_v19, 7 }
  0x4d   :  { %433 = vmatpush3.bf16.msra.mxu0 %v489_v1  ;;  %439 = vmatpush3.bf16.msra.mxu1 %v490_v5  ;;  %v495_v10 = vld [vmem:[#allocation7 + $0x28] sm:$0xff]   ;;  %v496_v11 = vld [vmem:[#allocation7 + $0x30] sm:$0xff]   ;;  %v497_v12 = vld [vmem:[#allocation7 + $0x38] sm:$0xff]  }
  0x4e   :  { %458 = vmatprep.subr.bf16.mxu0 %v632_v0  ;;  %440 = vmatprep.subr.bf16.mxu1 %v632_v0  ;;  %v498_v13 = vld [vmem:[#allocation8] sm:$0xff]   ;;  %v499_v14 = vld [vmem:[#allocation8 + $0x8] sm:$0xff]   ;;  %v500_v15 = vld [vmem:[#allocation8 + $0x10] sm:$0xff]   ;;  %v92_v23 = vsub.s32 0, %v91_v20 }
  0x4f   :  { %v501_v16 = vld [vmem:[#allocation8 + $0x18] sm:$0xff]   ;;  %v502_v17 = vld [vmem:[#allocation8 + $0x20] sm:$0xff]   ;;  %v503_v18 = vld [vmem:[#allocation8 + $0x28] sm:$0xff]  }
  0x50   :  { %435 = vmatmul.mubr.msk.bf16.vlgmr.msra.gmra.mrb[0].mxu0 %vm100_vm1, %v88_v4  ;;  %v87_v21 = vld [vmem:[%s791_s2] sm:$0x1]  ;;  %v504_v34 = vld [vmem:[#allocation8 + $0x30] sm:$0xff]   ;;  %v505_v35 = vld [vmem:[#allocation8 + $0x38] sm:$0xff]  }
  0x51   :  { %474 = vmatprep.mubr.msk.bf16.mxu0 %vm633_vm0, %v632_v0  ;;  %441 = vmatpush3.bf16.msra.mxu1 %v491_v6  ;;  %v89_v22 = vunpack.c.l.bf16 %v87_v21  ;;  %v163_v36 = vld [vmem:[%s793_s4] sm:$0x1]  ;;  %s634_s4 = smov [#allocation10]  }
  0x52   :  { %442 = vmatprep.subr.bf16.mxu1 %v632_v0  ;;  %459 = vmatpush3.bf16.msra.mxu0 %v498_v13  ;;  %v165_v37 = vunpack.c.l.bf16 %v163_v36  ;;  %v277_v48 = vld [vmem:[%s795_s6] sm:$0x1]  ;;  %s380_s9 = sshll.u32 %s634_s4, 4  ;;  %s381_s9 = int_to_ptr.vmem [resolvable:$true] %s380_s9 }
  0x53   :  { %460 = vmatprep.subr.bf16.mxu0 %v632_v0  ;;  %v93_v24 = vrot.slane %v89_v22, %v92_v23  ;;  %v279_v49 = vunpack.c.l.bf16 %v277_v48  ;;  %s594_s10 = scalar_lea.vmem %s381_s9, 256  ;;  %p599_p5 = scmp.lt.s32.totalorder %s381_s9, %s381_s9 }
  0x54   :  { %v169_v38 = vrot.slane %v165_v37, %v92_v23  ;;  %p595_p4 = scmp.ne.s32.totalorder %s381_s9, %s594_s10  ;;  %p600_p6 = scmp.lt.s32.totalorder %s594_s10, %s594_s10 }
  0x55   :  { %443 = vmatpush3.bf16.msra.mxu1 %v492_v7  ;;  %v283_v50 = vrot.slane %v279_v49, %v92_v23 }
  0x56   :  { %444 = vmatprep.subr.bf16.mxu1 %v632_v0  ;;  %461 = vmatpush3.bf16.msra.mxu0 %v499_v14  ;;  %p601_p7 = por %p600_p6, %p599_p5 }
  0x57   :  { %462 = vmatprep.subr.bf16.mxu0 %v632_v0 }
  0x58   :  { %p602_p8 = pnand %p601_p7, %p595_p4 }
  0x59   :  { %445 = vmatpush3.bf16.msra.mxu1 %v493_v8 }
  0x5a   :  { %446 = vmatprep.subr.bf16.mxu1 %v632_v0  ;;  %463 = vmatpush3.bf16.msra.mxu0 %v500_v15 }
  0x5b   :  { %464 = vmatprep.subr.bf16.mxu0 %v632_v0 }
  0x5d   :  { %447 = vmatpush3.bf16.msra.mxu1 %v494_v9 }
  0x5e   :  { %448 = vmatprep.subr.bf16.mxu1 %v632_v0  ;;  %465 = vmatpush3.bf16.msra.mxu0 %v501_v16 }
  0x5f   :  { %466 = vmatprep.subr.bf16.mxu0 %v632_v0 }
  0x61   :  { %449 = vmatpush3.bf16.msra.mxu1 %v495_v10 }
  0x62   :  { %450 = vmatprep.subr.bf16.mxu1 %v632_v0  ;;  %467 = vmatpush3.bf16.msra.mxu0 %v502_v17 }
  0x63   :  { %468 = vmatprep.subr.bf16.mxu0 %v632_v0 }
  0x65   :  { %451 = vmatpush3.bf16.msra.mxu1 %v496_v11 }
  0x66   :  { %452 = vmatprep.subr.bf16.mxu1 %v632_v0  ;;  %469 = vmatpush3.bf16.msra.mxu0 %v503_v18 }
  0x67   :  { %470 = vmatprep.subr.bf16.mxu0 %v632_v0 }
  0x69   :  { %453 = vmatpush3.bf16.msra.mxu1 %v497_v12 }
  0x6a   :  { %471 = vmatpush3.bf16.msra.mxu0 %v504_v34 }
  0x6b   :  { %472 = vmatprep.subr.bf16.mxu0 %v632_v0 }
  0x6e   :  { %473 = vmatpush3.bf16.msra.mxu0 %v505_v35 }
 0x123   :  { %v138_v25 = vpop.f32.mrb[0].mxu0 }
 0x124   :  { %v139_v26 = vadd.f32 %v138_v25, %v93_v24  ;;  %v436_v27 = vpop.f32.mrb[1].mxu0 }
 0x125   :  { %v141_v28 = vpop.f32.mrb[2].mxu0 }
 0x126   :  { %v142_v29 = vadd.f32 %v141_v28, %v93_v24  ;;  %v437_v30 = vpop.f32.mrb[3].mxu0  ;;  %v145_v31 = vmax.f32 %v139_v26, 0.0 }
 0x128   :  { %v146_v32 = vmax.f32 %v142_v29, 0.0 }
 0x12a   :  { %v164_v33 = vpack.c.bf16 %v146_v32, %v145_v31 }
 0x12c   :  { %455 = vmatmul.mubr.bf16.vlgmr.msra.gmra.mrb[0].mxu1 %v164_v33 }
 0x1ff   :  { %v252_v39 = vpop.f32.mrb[0].mxu1 }
 0x200   :  { %v253_v40 = vadd.f32 %v252_v39, %v169_v38  ;;  %v456_v41 = vpop.f32.mrb[1].mxu1 }
 0x201   :  { %v255_v42 = vpop.f32.mrb[2].mxu1 }
 0x202   :  { %v256_v43 = vadd.f32 %v255_v42, %v169_v38  ;;  %v457_v44 = vpop.f32.mrb[3].mxu1  ;;  %v259_v45 = vmax.f32 %v253_v40, 0.0 }
 0x204   :  { %v260_v46 = vmax.f32 %v256_v43, 0.0 }
 0x206   :  { %v278_v47 = vpack.c.bf16 %v260_v46, %v259_v45 }
 0x208   :  { %475 = vmatmul.mubr.bf16.vlgmr.msra.gmra.mrb[4].mxu0 %v278_v47 }
 0x2db   :  { %v366_v51 = vpop.f32.mrb[4].mxu0 }
 0x2dc   :  { %v367_v52 = vadd.f32 %v366_v51, %v283_v50  ;;  %v476_v53 = vpop.f32.mrb[5].mxu0 }
 0x2dd   :  { %v369_v54 = vpop.f32.mrb[6].mxu0 }
 0x2de   :  { %373 = vst [vmem:[#allocation10] sm:$0xff] %v367_v52  ;;  %v370_v55 = vadd.f32 %v369_v54, %v283_v50  ;;  %v477_v56 = vpop.f32.mrb[7].mxu0 }
 0x2e0   :  { %374 = vst [vmem:[#allocation10 + $0x8] sm:$0xff] %v370_v55 }
 0x2e1   :  { %605 = shalt.err (!%p602_p8)
}
 0x2e2   :  { %s606_s14 = scalar_lea.hbm %s796_s7, 256 }
 0x2e3   :  { %p607_p9 = scmp.ne.s32.totalorder %s796_s7, %s606_s14  ;;  %p610_p10 = scmp.lt.u32.totalorder %s606_s14, %s796_s7 }
 0x2e5   :  { %p612_p11 = pnand %p610_p10, %p607_p9 }
 0x2e7   :  { %615 = shalt.err (!%p612_p11)
}
 0x2e8   :  { %386 = dma.vmem_to_hbm [thread:$0]  %s381_s9, 256, %s796_s7, [#allocation4], %s628_s1, %s628_s1, %s629_s25  }
 0x2e9   :  { %622 = dma.done.wait [#allocation4], 256  }
 0x2ea   :  { %623 = vsyncadd [#allocation4], 4294967040 }
 0x2eb   :  { %390 = vsyncpa [#allocation3], 1 }
 0x2ec   :  { %391 = vsyncpa [#allocation6], 1 }
 0x2ed   :  { %392 = vsyncpa [#allocation9], 1 }
 0x2ee   :  { %393 = vsyncpa [#allocation4], 1 }

</bundles_post_ra>
